<compile_context>
chip_gen: v5e
topology: v5e:2x2
jax: 0.10.0
libtpu: 0.0.40
codegen_flags: <defaults>
</compile_context>

<pallas_src>
import jax
import jax.numpy as jnp
from jax.experimental import pallas as pl
from jax.experimental.pallas import tpu as pltpu


# ---------------------------------------------------------------------------
# Small helpers
# ---------------------------------------------------------------------------
def _round_up(n, m):
    return ((n + m - 1) // m) * m


def _cdiv(a, b):
    return (a + b - 1) // b


def _pick_tile(requested, total, quantum=8):
    """Clamp a requested tile to a multiple of `quantum`, capped by the
    (rounded-up) problem size.  Avoids (8,128) BlockSpec violations."""
    total_q = _round_up(max(int(total), 1), quantum)
    req_q = max(quantum, (int(requested) // quantum) * quantum)
    return min(req_q, total_q)


_BUFFERED_WEIGHTS_OK = None


def _single_buffered_weights_supported():
    """Probe (once) whether BlockSpec(pipeline_mode=pl.Buffered(1)) works, so
    grid-invariant weights are kept as a single resident VMEM copy instead of
    being double-buffered."""
    global _BUFFERED_WEIGHTS_OK
    if _BUFFERED_WEIGHTS_OK is not None:
        return _BUFFERED_WEIGHTS_OK
    ok = False
    if hasattr(pl, "Buffered"):
        try:
            def _k(x_ref, w_ref, o_ref):
                o_ref[...] = x_ref[...] + w_ref[...]

            fn = pl.pallas_call(
                _k,
                out_shape=jax.ShapeDtypeStruct((16, 128), jnp.float32),
                grid=(2,),
                in_specs=[
                    pl.BlockSpec((8, 128), lambda i: (i, 0)),
                    pl.BlockSpec((8, 128), lambda i: (0, 0),
                                 pipeline_mode=pl.Buffered(1)),
                ],
                out_specs=pl.BlockSpec((8, 128), lambda i: (i, 0)),
            )
            res = fn(jnp.zeros((16, 128), jnp.float32),
                     jnp.ones((8, 128), jnp.float32))
            ok = bool(jnp.allclose(jax.block_until_ready(res), 1.0))
        except Exception:
            ok = False
    _BUFFERED_WEIGHTS_OK = ok
    return ok


def _resident_spec(block_shape, index_map):
    """BlockSpec for grid-invariant operands (weights / biases): constant
    index_map keeps them VMEM-resident; single-buffered when supported."""
    if _single_buffered_weights_supported():
        return pl.BlockSpec(block_shape, index_map,
                            pipeline_mode=pl.Buffered(1))
    return pl.BlockSpec(block_shape, index_map)


def _vmem_limit_bytes(resident_bytes, streamed_bytes):
    """Explicit scoped-VMEM budget: resident weights (x1 or x2 depending on
    buffering) + double-buffered streamed tiles + headroom, capped below the
    chip's physical VMEM (128 MiB v5e/v6e, 64 MiB v7x)."""
    mult = 1 if _single_buffered_weights_supported() else 2
    need = mult * int(resident_bytes) + 2 * int(streamed_bytes)
    need = int(need * 1.5) + (4 << 20)
    cap = 128 << 20
    try:
        info = pltpu.get_tpu_info()
        cap = int(getattr(info, "vmem_capacity_bytes", cap))
    except Exception:
        pass
    return int(min(max(need, 32 << 20), int(cap * 0.9)))


# ---------------------------------------------------------------------------
# Kernel 1: fused proj (Linear) + LayerNorm over tokens.
# ---------------------------------------------------------------------------
def _proj_ln_kernel(x_ref, w_ref, b_ref, gamma_ref, beta_ref, o_ref):
    # x_ref: (TM, H_in)  w_ref: (H_in, C) bf16  b/gamma/beta: (1, C) f32
    x = x_ref[...].astype(w_ref.dtype)                    # bf16 MXU operand
    h = jnp.dot(x, w_ref[...], preferred_element_type=jnp.float32)
    h = h + b_ref[...]                                    # f32 from here on
    mu = jnp.mean(h, axis=-1, keepdims=True)
    var = jnp.mean(jnp.square(h - mu), axis=-1, keepdims=True)
    inv = jax.lax.rsqrt(var + 1e-5)                       # nn.LayerNorm eps
    y = (h - mu) * inv * gamma_ref[...] + beta_ref[...]
    o_ref[...] = y.astype(o_ref.dtype)


# ---------------------------------------------------------------------------
# Kernel 2: one AdapterLayer = Conv1d + GLU with in-kernel im2col.
#   x_ref:    (TT, S*C)            current time tile (stride folded into lanes)
#   halo_ref: (8,  S*C)            first rows of the next tile (same array)
#   w_ref:    (n_shift*S*C, 2C)    conv taps, zero rows for unused taps
#   b_ref:    (1, 2C)              f32 bias
#   o_ref:    (TT, C)
# ---------------------------------------------------------------------------
def _conv_glu_kernel(x_ref, halo_ref, w_ref, b_ref, o_ref):
    tt, sc = x_ref.shape
    c = o_ref.shape[-1]
    n_shift = w_ref.shape[0] // sc

    if n_shift > 1:
        win = jnp.concatenate([x_ref[...], halo_ref[...]], axis=0)
    else:
        win = x_ref[...]

    acc = jnp.zeros((tt, 2 * c), jnp.float32) + b_ref[...]
    for dr in range(n_shift):                             # static unrolled
        acc = acc + jnp.dot(win[dr:dr + tt, :],
                            w_ref[dr * sc:(dr + 1) * sc, :],
                            preferred_element_type=jnp.float32)

    val = acc[:, :c]                                      # GLU split on f32 acc
    gate = acc[:, c:]
    o_ref[...] = (val * jax.nn.sigmoid(gate)).astype(o_ref.dtype)


# ---------------------------------------------------------------------------
# Wrappers
# ---------------------------------------------------------------------------
def proj_layer_norm(x, w_proj_t, b_proj, ln_gamma, ln_beta, *, tile_m=512,
                    compute_dtype=jnp.bfloat16, out_dtype=None):
    """x: (B, T, H_in); w_proj_t: (H_in, C) (nn.Linear weight pre-transposed)."""
    B, T, H_in = x.shape
    C = w_proj_t.shape[1]
    if out_dtype is None:
        out_dtype = x.dtype
    M = B * T

    TM = _pick_tile(tile_m, M)
    while _cdiv(M, TM) < 2 and TM > 8:                    # keep >=2 grid steps
        TM = max(8, (TM // 2) // 8 * 8)
    Mp = _round_up(M, TM)

    x2 = x.reshape(M, H_in)
    if Mp != M:
        x2 = jnp.pad(x2, ((0, Mp - M), (0, 0)))

    w = w_proj_t.astype(compute_dtype)                    # bf16 MXU weight
    b = b_proj.reshape(1, C).astype(jnp.float32)
    gamma = ln_gamma.reshape(1, C).astype(jnp.float32)
    beta = ln_beta.reshape(1, C).astype(jnp.float32)

    xbytes = jnp.dtype(x2.dtype).itemsize
    cbytes = jnp.dtype(compute_dtype).itemsize
    obytes = jnp.dtype(out_dtype).itemsize
    resident = H_in * C * cbytes + 3 * C * 4
    streamed = TM * H_in * xbytes + TM * C * obytes

    out = pl.pallas_call(
        _proj_ln_kernel,
        out_shape=jax.ShapeDtypeStruct((Mp, C), out_dtype),
        grid_spec=pl.GridSpec(
            grid=(Mp // TM,),
            in_specs=[
                pl.BlockSpec((TM, H_in), lambda i: (i, 0)),
                _resident_spec((H_in, C), lambda i: (0, 0)),
                _resident_spec((1, C), lambda i: (0, 0)),
                _resident_spec((1, C), lambda i: (0, 0)),
                _resident_spec((1, C), lambda i: (0, 0)),
            ],
            out_specs=pl.BlockSpec((TM, C), lambda i: (i, 0)),
        ),
        compiler_params=pltpu.CompilerParams(
            dimension_semantics=("parallel",),
            vmem_limit_bytes=_vmem_limit_bytes(resident, streamed)),
        cost_estimate=pl.CostEstimate(
            flops=2 * Mp * H_in * C,
            transcendentals=Mp,
            bytes_accessed=Mp * H_in * xbytes + H_in * C * cbytes
                           + Mp * C * obytes),
    )(x2, w, b, gamma, beta)

    return out[:M].reshape(B, T, C)


def adapter_layer(x, conv_w, conv_b, *, stride, padding=1, tile_t=256,
                  compute_dtype=jnp.bfloat16, out_dtype=None):
    """One AdapterLayer (Conv1d C -> 2C + GLU), channels-last.

    x: (B, T, C); conv_w: (2C, C, K) in PyTorch Conv1d layout; conv_b: (2C,).
    Returns (B, T_out, C) with T_out = floor((T + 2*pad - K)/stride) + 1.
    """
    B, T, C = x.shape
    two_c, c_in, K = conv_w.shape
    assert c_in == C and two_c == 2 * C
    S = int(stride)
    if out_dtype is None:
        out_dtype = x.dtype
    T_out = (T + 2 * padding - K) // S + 1
    assert T_out >= 1

    SC = S * C
    n_shift = (K - 1) // S + 1          # reshaped rows touched per output row
    HALO = 8                            # halo rows fetched from the next block
    assert n_shift - 1 <= HALO, "kernel halo too small for this K/stride"

    TT = _pick_tile(tile_t, T_out)
    while B * _cdiv(T_out, TT) < 2 and TT > 8:            # keep >=2 grid steps
        TT = max(8, (TT // 2) // 8 * 8)
    n_blocks = _cdiv(T_out, TT)
    Tp = n_blocks * TT

    # Zero-pad time (conv padding + tile/halo padding), cast to bf16, then a
    # *free* reshape folds the stride into the lane axis:
    #     (B, L, C) -> (B, L//S, S*C);  reshaped row r = positions [r*S,(r+1)*S)
    # No K*C-widened im2col tensor is ever written to HBM.
    L = (n_blocks * TT + HALO) * S
    xp = jnp.pad(x.astype(compute_dtype),
                 ((0, 0), (padding, L - T - padding), (0, 0)))
    xr = xp.reshape(B, L // S, SC)
    Lr = L // S

    # Conv weight (2C, C, K) -> (n_shift*S*C, 2C): row (dr*S + s)*C + c_in holds
    # tap k = dr*S + s (zero rows for k >= K).  Value/gate stay fused; the GLU
    # split happens on the f32 accumulator inside the kernel.
    w_k = jnp.transpose(conv_w, (2, 1, 0))                       # (K, C, 2C)
    w_full = jnp.zeros((n_shift * S, C, 2 * C), conv_w.dtype).at[:K].set(w_k)
    w_tap = w_full.reshape(n_shift * SC, 2 * C).astype(compute_dtype)
    b2 = conv_b.reshape(1, 2 * C).astype(jnp.float32)

    cbytes = jnp.dtype(compute_dtype).itemsize
    obytes = jnp.dtype(out_dtype).itemsize
    resident = n_shift * SC * 2 * C * cbytes + 2 * C * 4
    streamed = (TT + HALO) * SC * cbytes + TT * C * obytes

    # TODO(synk): if C is not a multiple of 128 in the real config, pad the
    # channel dim (and conv weights) to 128 so output stores are unmasked.
    out = pl.pallas_call(
        _conv_glu_kernel,
        out_shape=jax.ShapeDtypeStruct((B, Tp, C), out_dtype),
        grid_spec=pl.GridSpec(
            grid=(B, n_blocks),
            in_specs=[
                # main tile: reshaped rows [i*TT, (i+1)*TT), batch dim squeezed
                pl.BlockSpec((None, TT, SC), lambda b, i: (b, i, 0)),
                # halo: 8 reshaped rows starting at (i+1)*TT (same array)
                pl.BlockSpec((None, HALO, SC),
                             lambda b, i: (b, (i + 1) * (TT // HALO), 0)),
                _resident_spec((n_shift * SC, 2 * C), lambda b, i: (0, 0)),
                _resident_spec((1, 2 * C), lambda b, i: (0, 0)),
            ],
            out_specs=pl.BlockSpec((None, TT, C), lambda b, i: (b, i, 0)),
        ),
        compiler_params=pltpu.CompilerParams(
            dimension_semantics=("parallel", "parallel"),
            vmem_limit_bytes=_vmem_limit_bytes(resident, streamed)),
        cost_estimate=pl.CostEstimate(
            flops=2 * B * Tp * (n_shift * SC) * (2 * C),
            transcendentals=B * Tp * C,
            bytes_accessed=B * Lr * SC * cbytes + n_shift * SC * 2 * C * cbytes
                           + B * Tp * C * obytes),
    )(xr, xr, w_tap, b2)

    return out[:, :T_out, :]


def adapter_forward(x, proj_params, layer_params, *, stride, padding=1,
                    tile_m=512, tile_t=256, compute_dtype=jnp.bfloat16):
    """Full Adapter forward (inference).

    proj_params: None or (w_proj_t, b_proj, ln_gamma, ln_beta)
    layer_params: list of (conv_w, conv_b) in PyTorch Conv1d layout.
    The two PyTorch transposes cancel: the conv runs channels-last, so no data
    movement is emitted for them.  Intermediate activations are carried in
    bf16; the final output is returned in the input dtype.
    """
    out_dtype = x.dtype
    n_layers = len(layer_params)
    if proj_params is not None:
        w_t, b, gamma, beta = proj_params
        x = proj_layer_norm(
            x, w_t, b, gamma, beta, tile_m=tile_m, compute_dtype=compute_dtype,
            out_dtype=out_dtype if n_layers == 0 else compute_dtype)
    for li, (conv_w, conv_b) in enumerate(layer_params):
        # TODO(synk): layerdrop is a training-time stochastic skip; at
        # inference every layer runs, so it is intentionally omitted here.
        x = adapter_layer(
            x, conv_w, conv_b, stride=stride, padding=padding, tile_t=tile_t,
            compute_dtype=compute_dtype,
            out_dtype=out_dtype if li == n_layers - 1 else compute_dtype)
    return x


# ---------------------------------------------------------------------------
# Pure-JAX reference (mirrors the PyTorch module and the kernels' bf16
# operand / f32 accumulate numerics) for the correctness check.
# ---------------------------------------------------------------------------
def _adapter_ref(x, proj_params, layer_params, *, stride, padding=1,
                 compute_dtype=jnp.bfloat16):
    out_dtype = x.dtype
    cd = compute_dtype
    n_layers = len(layer_params)
    if proj_params is not None:
        w_t, b, gamma, beta = proj_params
        h = jnp.dot(x.astype(cd), w_t.astype(cd),
                    preferred_element_type=jnp.float32) + b
        mu = jnp.mean(h, axis=-1, keepdims=True)
        var = jnp.mean(jnp.square(h - mu), axis=-1, keepdims=True)
        y = (h - mu) * jax.lax.rsqrt(var + 1e-5) * gamma + beta
        x = y.astype(cd if n_layers else out_dtype)
    for li, (conv_w, conv_b) in enumerate(layer_params):
        B, T, C = x.shape
        K = conv_w.shape[-1]
        T_out = (T + 2 * padding - K) // stride + 1
        xp = jnp.pad(x.astype(cd), ((0, 0), (padding, padding), (0, 0)))
        y = jnp.zeros((B, T_out, 2 * C), jnp.float32) + conv_b
        for k in range(K):
            xs = jax.lax.slice(xp, (0, k, 0),
                               (B, k + (T_out - 1) * stride + 1, C),
                               (1, stride, 1))
            y = y + jnp.einsum("btc,oc->bto", xs, conv_w[:, :, k].astype(cd),
                               preferred_element_type=jnp.float32)
        a, g = y[..., :C], y[..., C:]
        out = a * jax.nn.sigmoid(g)
        x = out.astype(cd if li < n_layers - 1 else out_dtype)
    return x


if __name__ == "__main__":
    # Toy config: hidden_size=48, output_hidden_size=32 (so proj + LayerNorm
    # are active), adapter_kernel_size=3, adapter_stride=2, padding=1,
    # num_adapter_layers=2.  Small tiles force multi-step grids.
    B, T, H_IN, C = 2, 64, 48, 32
    K, S, PAD, N_LAYERS = 3, 2, 1, 2

    key = jax.random.PRNGKey(0)
    keys = jax.random.split(key, 5 + 2 * N_LAYERS)

    x = jax.random.normal(keys[0], (B, T, H_IN), jnp.float32)
    w_proj_t = jax.random.normal(keys[1], (H_IN, C), jnp.float32) * 0.1
    b_proj = jax.random.normal(keys[2], (C,), jnp.float32) * 0.01
    ln_gamma = 1.0 + 0.05 * jax.random.normal(keys[3], (C,), jnp.float32)
    ln_beta = 0.05 * jax.random.normal(keys[4], (C,), jnp.float32)
    proj_params = (w_proj_t, b_proj, ln_gamma, ln_beta)

    layer_params = []
    for l in range(N_LAYERS):
        cw = jax.random.normal(keys[5 + 2 * l], (2 * C, C, K), jnp.float32) * 0.1
        cb = jax.random.normal(keys[6 + 2 * l], (2 * C,), jnp.float32) * 0.01
        layer_params.append((cw, cb))

    out = adapter_forward(x, proj_params, layer_params,
                          stride=S, padding=PAD, tile_m=64, tile_t=8)
    out = jax.block_until_ready(out)

    ref = _adapter_ref(x, proj_params, layer_params, stride=S, padding=PAD)
    assert out.shape == ref.shape, (out.shape, ref.shape)
    assert out.dtype == ref.dtype, (out.dtype, ref.dtype)
    err = float(jnp.max(jnp.abs(out.astype(jnp.float32) - ref.astype(jnp.float32))))
    assert jnp.allclose(out, ref, atol=1e-2, rtol=1e-2), (
        f"mismatch vs reference: max abs err {err}")

    print("KERNEL_OK")
</pallas_src>

<mosaic_0001>
module attributes {stable_mosaic.version = 11 : i64} {
  func.func @_k(%arg0: i32, %arg1: memref<8x128xf32, #tpu.memory_space<vmem>>, %arg2: memref<8x128xf32, #tpu.memory_space<vmem>>, %arg3: memref<8x128xf32, #tpu.memory_space<vmem>>) attributes {dimension_semantics = [#tpu.dimension_semantics<arbitrary>], iteration_bounds = array<i64: 2>, scalar_prefetch = 0 : i64, scratch_operands = 0 : i64, tpu.core_type = #tpu.core_type<tc>, window_params = [{transform_indices = @transform_0, window_bounds = array<i64: 8, 128>}, {pipeline_mode = #tpu.pipeline_mode<synchronous>, transform_indices = @transform_1, window_bounds = array<i64: 8, 128>}, {transform_indices = @transform_2, window_bounds = array<i64: 8, 128>}]} {
    %c0 = arith.constant 0 : index
    %c0_0 = arith.constant 0 : index
    %0 = vector.load %arg1[%c0, %c0_0] : memref<8x128xf32, #tpu.memory_space<vmem>>, vector<8x128xf32>
    %c0_1 = arith.constant 0 : index
    %c0_2 = arith.constant 0 : index
    %1 = vector.load %arg2[%c0_1, %c0_2] : memref<8x128xf32, #tpu.memory_space<vmem>>, vector<8x128xf32>
    %2 = arith.addf %0, %1 : vector<8x128xf32>
    %c0_3 = arith.constant 0 : index
    %c0_4 = arith.constant 0 : index
    %3 = vector.load %arg3[%c0_3, %c0_4] : memref<8x128xf32, #tpu.memory_space<vmem>>, vector<8x128xf32>
    tpu.vector_store %arg3[%c0_3, %c0_4], %2 {strides = array<i32>} : memref<8x128xf32, #tpu.memory_space<vmem>>, vector<8x128xf32>,
    return
  }
  func.func @transform_0(%arg0: i32) -> (i32, i32) {
    %c0_i32 = arith.constant 0 : i32
    %c0_i32_0 = arith.constant 0 : i32
    return %arg0, %c0_i32 : i32, i32
  }
  func.func @transform_1(%arg0: i32) -> (i32, i32) {
    %c0_i32 = arith.constant 0 : i32
    %c0_i32_0 = arith.constant 0 : i32
    %c0_i32_1 = arith.constant 0 : i32
    return %c0_i32, %c0_i32_0 : i32, i32
  }
  func.func @transform_2(%arg0: i32) -> (i32, i32) {
    %c0_i32 = arith.constant 0 : i32
    %c0_i32_0 = arith.constant 0 : i32
    return %arg0, %c0_i32 : i32, i32
  }
}

module attributes {stable_mosaic.version = 11 : i64} {
  func.func @_proj_ln_kernel(%arg0: i32, %arg1: memref<64x48xf32, #tpu.memory_space<vmem>>, %arg2: memref<48x32xbf16, #tpu.memory_space<vmem>>, %arg3: memref<1x32xf32, #tpu.memory_space<vmem>>, %arg4: memref<1x32xf32, #tpu.memory_space<vmem>>, %arg5: memref<1x32xf32, #tpu.memory_space<vmem>>, %arg6: memref<64x32xbf16, #tpu.memory_space<vmem>>) attributes {dimension_semantics = [#tpu.dimension_semantics<parallel>], iteration_bounds = array<i64: 2>, scalar_prefetch = 0 : i64, scratch_operands = 0 : i64, tpu.core_type = #tpu.core_type<tc>, window_params = [{transform_indices = @transform_0, window_bounds = array<i64: 64, 48>}, {pipeline_mode = #tpu.pipeline_mode<synchronous>, transform_indices = @transform_1, window_bounds = array<i64: 48, 32>}, {pipeline_mode = #tpu.pipeline_mode<synchronous>, transform_indices = @transform_2, window_bounds = array<i64: 1, 32>}, {pipeline_mode = #tpu.pipeline_mode<synchronous>, transform_indices = @transform_3, window_bounds = array<i64: 1, 32>}, {pipeline_mode = #tpu.pipeline_mode<synchronous>, transform_indices = @transform_4, window_bounds = array<i64: 1, 32>}, {transform_indices = @transform_5, window_bounds = array<i64: 64, 32>}]} {
    %c0 = arith.constant 0 : index
    %c0_0 = arith.constant 0 : index
    %0 = vector.load %arg1[%c0, %c0_0] : memref<64x48xf32, #tpu.memory_space<vmem>>, vector<64x48xf32>
    %1 = arith.truncf %0 : vector<64x48xf32> to vector<64x48xbf16>
    %c0_1 = arith.constant 0 : index
    %c0_2 = arith.constant 0 : index
    %2 = vector.load %arg2[%c0_1, %c0_2] : memref<48x32xbf16, #tpu.memory_space<vmem>>, vector<48x32xbf16>
    %cst = arith.constant dense<0.000000e+00> : vector<64x32xf32>
    %3 = tpu.matmul %1, %2, %cst {dimension_numbers = #tpu.dot_dimension_numbers<[1], [0], [0], [1], [0, 0, 1, 1], [], []>} : vector<64x48xbf16>, vector<48x32xbf16>, vector<64x32xf32> -> vector<64x32xf32>
    %c0_3 = arith.constant 0 : index
    %c0_4 = arith.constant 0 : index
    %4 = vector.load %arg3[%c0_3, %c0_4] : memref<1x32xf32, #tpu.memory_space<vmem>>, vector<1x32xf32>
    %5 = vector.broadcast %4 : vector<1x32xf32> to vector<64x32xf32>
    %6 = arith.addf %3, %5 : vector<64x32xf32>
    %cst_5 = arith.constant dense<0.000000e+00> : vector<64xf32>
    %7 = vector.multi_reduction <add>, %6, %cst_5 [1] : vector<64x32xf32> to vector<64xf32>
    %8 = vector.shape_cast %7 : vector<64xf32> to vector<64x1xf32>
    %cst_6 = arith.constant 3.200000e+01 : f32
    %9 = vector.broadcast %cst_6 : f32 to vector<64x1xf32>
    %10 = arith.divf %8, %9 : vector<64x1xf32>
    %11 = vector.broadcast %10 : vector<64x1xf32> to vector<64x32xf32>
    %12 = arith.subf %6, %11 : vector<64x32xf32>
    %13 = arith.mulf %12, %12 : vector<64x32xf32>
    %cst_7 = arith.constant dense<0.000000e+00> : vector<64xf32>
    %14 = vector.multi_reduction <add>, %13, %cst_7 [1] : vector<64x32xf32> to vector<64xf32>
    %15 = vector.shape_cast %14 : vector<64xf32> to vector<64x1xf32>
    %cst_8 = arith.constant 3.200000e+01 : f32
    %16 = vector.broadcast %cst_8 : f32 to vector<64x1xf32>
    %17 = arith.divf %15, %16 : vector<64x1xf32>
    %cst_9 = arith.constant 9.99999974E-6 : f32
    %18 = vector.broadcast %cst_9 : f32 to vector<64x1xf32>
    %19 = arith.addf %17, %18 : vector<64x1xf32>
    %20 = math.rsqrt %19 : vector<64x1xf32>
    %21 = vector.broadcast %10 : vector<64x1xf32> to vector<64x32xf32>
    %22 = arith.subf %6, %21 : vector<64x32xf32>
    %23 = vector.broadcast %20 : vector<64x1xf32> to vector<64x32xf32>
    %24 = arith.mulf %22, %23 : vector<64x32xf32>
    %c0_10 = arith.constant 0 : index
    %c0_11 = arith.constant 0 : index
    %25 = vector.load %arg4[%c0_10, %c0_11] : memref<1x32xf32, #tpu.memory_space<vmem>>, vector<1x32xf32>
    %26 = vector.broadcast %25 : vector<1x32xf32> to vector<64x32xf32>
    %27 = arith.mulf %24, %26 : vector<64x32xf32>
    %c0_12 = arith.constant 0 : index
    %c0_13 = arith.constant 0 : index
    %28 = vector.load %arg5[%c0_12, %c0_13] : memref<1x32xf32, #tpu.memory_space<vmem>>, vector<1x32xf32>
    %29 = vector.broadcast %28 : vector<1x32xf32> to vector<64x32xf32>
    %30 = arith.addf %27, %29 : vector<64x32xf32>
    %31 = arith.truncf %30 : vector<64x32xf32> to vector<64x32xbf16>
    %c0_14 = arith.constant 0 : index
    %c0_15 = arith.constant 0 : index
    %32 = vector.load %arg6[%c0_14, %c0_15] : memref<64x32xbf16, #tpu.memory_space<vmem>>, vector<64x32xbf16>
    tpu.vector_store %arg6[%c0_14, %c0_15], %31 {strides = array<i32>} : memref<64x32xbf16, #tpu.memory_space<vmem>>, vector<64x32xbf16>,
    return
  }
  func.func @transform_0(%arg0: i32) -> (i32, i32) {
    %c0_i32 = arith.constant 0 : i32
    %c0_i32_0 = arith.constant 0 : i32
    return %arg0, %c0_i32 : i32, i32
  }
  func.func @transform_1(%arg0: i32) -> (i32, i32) {
    %c0_i32 = arith.constant 0 : i32
    %c0_i32_0 = arith.constant 0 : i32
    %c0_i32_1 = arith.constant 0 : i32
    return %c0_i32, %c0_i32_0 : i32, i32
  }
  func.func @transform_2(%arg0: i32) -> (i32, i32) {
    %c0_i32 = arith.constant 0 : i32
    %c0_i32_0 = arith.constant 0 : i32
    %c0_i32_1 = arith.constant 0 : i32
    return %c0_i32, %c0_i32_0 : i32, i32
  }
  func.func @transform_3(%arg0: i32) -> (i32, i32) {
    %c0_i32 = arith.constant 0 : i32
    %c0_i32_0 = arith.constant 0 : i32
    %c0_i32_1 = arith.constant 0 : i32
    return %c0_i32, %c0_i32_0 : i32, i32
  }
  func.func @transform_4(%arg0: i32) -> (i32, i32) {
    %c0_i32 = arith.constant 0 : i32
    %c0_i32_0 = arith.constant 0 : i32
    %c0_i32_1 = arith.constant 0 : i32
    return %c0_i32, %c0_i32_0 : i32, i32
  }
  func.func @transform_5(%arg0: i32) -> (i32, i32) {
    %c0_i32 = arith.constant 0 : i32
    %c0_i32_0 = arith.constant 0 : i32
    return %arg0, %c0_i32 : i32, i32
  }
}

</mosaic_0001>

<bundles_post_ra>
// kernel: tpu_custom_call.1
= control target key start
LH: loop header
LB: loop body
LE: loop exit
PB: predicated region body
PF: predicated region fallthrough
CT: control target
= control target key end

     0   :  { %7 = vsyncpa [#allocation3], 0  ;;  %s633_s0 = inlined_call_operand.hbm [shape: f32[16,128], index: 0, kind: input, shape index: {}]   ;;  %s634_s1 = inlined_call_operand.hbm [shape: f32[8,128], index: 1, kind: input, shape index: {}]   ;;  %s635_s2 = inlined_call_operand.hbm [shape: f32[16,128], index: 2, kind: output, shape index: {}]  }
   0x1   :  { %9 = vsyncpa [#allocation3 + $0x1], 0 }
   0x2   :  { %10 = vsyncpa [#allocation6], 0 }
   0x3   :  { %11 = vsyncpa [#allocation4], 0 }
   0x4   :  { %13 = vsyncpa [#allocation4 + $0x1], 0  ;;  %s495_s9 = smov 0   ;;  %s497_s10 = smov 0  }
   0x5   :  { %s499_s11 = smov 0   ;;  %s501_s12 = smov 0  }
   0x6 LB: > { %s516_s13 = sadd.s32 4294967295, %s477_s12   ;;  %s276_s14 = sadd.s32 4294967294, %s477_s12   ;;  %s477_s12 = sphi %s501_s12, %s645_s12   ;;  %s473_s11 = sphi %s499_s11, %s644_s11   ;;  %s469_s10 = sphi %s497_s10, %s643_s10   ;;  %s465_s9 = sphi %s495_s9, %s642_s9  }
   0x7   : > { %p39_p0 = scmp.ne.s32.totalorder %s469_s10, %s465_s9  ;;  %p40_p1 = scmp.eq.s32.totalorder %s516_s13, 0 }
   0x8   : > { %p84_p2 = scmp.eq.s32.totalorder %s516_s13, 1  ;;  %p90_p3 = scmp.eq.s32.totalorder %s276_s14, 1 }
   0x9   : > { %p525_p4 = por %p40_p1, %p39_p0  ;;  %p277_p5 = scmp.ge.s32.totalorder %s477_s12, 1 }
   0xa   : > { %p530_p6 = por %p90_p3, %p39_p0  ;;  %p97_p7 = scmp.lt.s32.totalorder %s477_s12, 3 }
   0xb   : > { %s109_s19 = sshll.u32 %s634_s1, 4  ;;  %s479_s21 = smov [#allocation5]   ;;  %s110_s19 = int_to_ptr.hbm [resolvable:$true] %s109_s19 }
   0xc   : > { %p538_p8 = pnand %p277_p5, %p97_p7  ;;  %s111_s22 = sshll.u32 %s479_s21, 4  ;;  %s112_s22 = int_to_ptr.vmem [resolvable:$true] %s111_s22 }
   0xd   : > { %s548_s23 = sadd.s32 1, %s477_s12   ;;  %s26_s24 = sadd.s32 1, %s473_s11 }
   0xe   : > { %p298_p10 = pneg %p538_p8  ;;  %s23_s25 = ssub.s32 %s477_s12, %s548_s23 }
   0xf   : > { %p24_p12 = scmp.eq.s32.totalorder %s23_s25, 0  ;;  %p33_p13 = scmp.ne.s32.totalorder %s473_s11, %s469_s10 }
  0x10   : > { %p299_p11 = pnand %p298_p10, %p40_p1  ;;  %p34_p0 = scmp.eq.s32.totalorder %s477_s12, 0 }
  0x11   : > { %s557_s26 = scalar_select %p24_p12, %s473_s11, %s26_s24  }
  0x12   : > { %301 = dma.hbm_to_vmem [thread:$0]  (!%p299_p11), %s110_s19, 128, %s112_s22, [#allocation6]  }
  0x13   : > { %p561_p3 = por %p84_p2, %p33_p13  ;;  %p311_p5 = scmp.lt.s32.totalorder %s477_s12, 2 }
  0x14   : > { %s122_s28 = sand.u32 1, %s473_s11   ;;  %s281_s29 = sshll.u32 %s477_s12, 3 }
  0x15   : > { %p35_p7 = por %p34_p0, %p33_p13  ;;  %s280_s30 = sshll.u32 %s122_s28, 3 }
  0x16   : > { %s130_s5 = scalar_lea.hbm %s633_s0, %s281_s29  ;;  %s126_s7 = scalar_lea.vmem [#allocation2], %s280_s30 }
  0x17   : > { %s132_s6 = sshll.u32 %s130_s5, 4  ;;  %s134_s8 = sshll.u32 %s126_s7, 4  ;;  %s133_s6 = int_to_ptr.hbm [resolvable:$true] %s132_s6  ;;  %s135_s8 = int_to_ptr.vmem [resolvable:$true] %s134_s8 }
  0x18   : > { %p571_p10 = pnand %p311_p5, %p35_p7  ;;  %s123_s17 = scalar_lea.sflag [#allocation3], %s122_s28 }
  0x19   : > { %s377_s18 = sshra.s32 %s133_s6, 4  ;;  %s384_s24 = scalar_lea.hbm %s633_s0, 16  ;;  %s378_s18 = int_to_ptr.hbm [resolvable:$true] %s377_s18 }
  0x1a   : > { %s379_s19 = scalar_lea.hbm %s378_s18, 8  ;;  %p381_p11 = pneg %p571_p10 }
  0x1b   : > { %p380_p2 = scmp.ne.s32.totalorder %s378_s18, %s379_s19  ;;  %p385_p0 = scmp.lt.s32.totalorder %s378_s18, %s633_s0 }
  0x1c   : > { %p386_p5 = scmp.lt.s32.totalorder %s384_s24, %s379_s19 }
  0x1d   : > { %p382_p12 = pnand %p381_p11, %p380_p2 }
  0x1e   : > { %p387_p7 = por %p386_p5, %p385_p0 }
  0x1f   : > { %p383_p13 = pneg %p382_p12 }
  0x21   : > { %p388_p9 = pnand %p387_p7, %p383_p13 }
  0x23   : > { %391 = shalt.err (!%p388_p9)
}
  0x24   : > { %305 = dma.hbm_to_vmem [thread:$0]  (!%p571_p10), %s133_s6, 128, %s135_s8, %s123_s17  }
  0x25   : > { %143 = sbr.rel (%p538_p8) target bundleno = 60 (0x3c), region = 28  ;;  %s588_s28 = sand.u32 (!%p538_p8), 1, %s469_s10  }
  0x26   : > { %s283_s30 = sshll.u32 (!%p538_p8), %s588_s28, 3  ;;  %s146_s3 = scalar_lea.sflag (!%p538_p8), [#allocation3], %s588_s28 }
  0x27   : > { %s149_s4 = scalar_lea.vmem (!%p538_p8), [#allocation2], %s283_s30 }
  0x2a   : > { %452 = dma.done.wait (%p525_p4), %s146_s3, 128  }
  0x2b   : > { %454 = vsyncadd (%p525_p4), %s146_s3, 4294967168 }
  0x2c   : > { %456 = dma.done.wait (%p40_p1), [#allocation6], 128  }
  0x2d   : > { %458 = vsyncadd (%p40_p1), [#allocation6], 4294967168  ;;  %s287_s20 = sshll.u32 %s516_s13, 3  ;;  %s175_s8 = scalar_lea.vmem [#allocation7], %s283_s30  ;;  %v176_v0 = vld [vmem:[%s149_s4] sm:$0xff]  ;;  %v177_v1 = vld [vmem:[#allocation5] sm:$0xff] }
  0x2e   : > { %s191_s7 = scalar_lea.hbm %s635_s2, %s287_s20  ;;  %s193_s14 = sshll.u32 %s175_s8, 4  ;;  %v178_v2 = vadd.f32 %v177_v1, %v176_v0  ;;  %s194_s14 = int_to_ptr.vmem [resolvable:$true] %s193_s14 }
  0x2f   : > { %s195_s17 = sshll.u32 %s191_s7, 4  ;;  %s181_s15 = scalar_lea.sflag [#allocation4], %s588_s28  ;;  %s196_s17 = int_to_ptr.hbm [resolvable:$true] %s195_s17 }
  0x30   : > { %179 = vst [vmem:[%s175_s8] sm:$0xff] %v178_v2  ;;  %s421_s18 = sshra.s32 %s196_s17, 4  ;;  %s427_s22 = scalar_lea.hbm %s635_s2, 16  ;;  %s422_s18 = int_to_ptr.hbm [resolvable:$true] %s421_s18 }
  0x31   : > { %s423_s19 = scalar_lea.hbm %s422_s18, 8  ;;  %p428_p9 = scmp.lt.s32.totalorder %s422_s18, %s635_s2 }
  0x32   : > { %p424_p1 = scmp.ne.s32.totalorder %s422_s18, %s423_s19  ;;  %p429_p10 = scmp.lt.s32.totalorder %s427_s22, %s423_s19 }
  0x34   : > { %p425_p4 = pnand %p424_p1, %p561_p3  ;;  %p430_p2 = por %p429_p10, %p428_p9 }
  0x36   : > { %p426_p8 = pneg %p425_p4 }
  0x38   : > { %p431_p11 = pnand %p430_p2, %p426_p8 }
  0x3a   : > { %434 = shalt.err (!%p431_p11)
}
  0x3b   : > { %296 = dma.vmem_to_hbm [thread:$0]  (%p561_p3), %s194_s14, 128, %s196_s17, %s181_s15  }
  0x3c PF: > { %s207_s29 = sand.u32 1, %s465_s9   ;;  %p641_p12 = scmp.ge.s32.totalorder %s477_s12, 2 }
  0x3d   : > { %s208_s28 = scalar_lea.sflag [#allocation4], %s207_s29 }
  0x3e   : > { %p307_p13 = pnand %p641_p12, %p530_p6 }
  0x40   : > { %p308_p0 = pneg %p307_p13 }
  0x42   : > { %460 = dma.done.wait (%p308_p0), %s208_s28, 128  }
  0x43   : > { %462 = vsyncadd (%p308_p0), %s208_s28, 4294967168  ;;  %p16_p5 = scmp.ge.s32.totalorder %s548_s23, 4   ;;  %s642_s9 = smov %s469_s10 }
  0x44   : > { %s643_s10 = smov %s473_s11  ;;  %s644_s11 = smov %s557_s26 }
  0x45   : > { %s645_s12 = smov %s548_s23  ;;  %18 = sbr.rel (!%p16_p5) target bundleno = 6 (0x6), region = 77 }
  0x4a   :  { %214 = vsyncpa [#allocation3], 1 }
  0x4b   :  { %216 = vsyncpa [#allocation3 + $0x1], 1 }
  0x4c   :  { %217 = vsyncpa [#allocation6], 1 }
  0x4d   :  { %218 = vsyncpa [#allocation4], 1 }
  0x4e   :  { %220 = vsyncpa [#allocation4 + $0x1], 1 }

// kernel: tpu_custom_call.1
= control target key start
LH: loop header
LB: loop body
LE: loop exit
PB: predicated region body
PF: predicated region fallthrough
CT: control target
= control target key end

     0   :  { %s700_s18 = smov 0   ;;  %s882_s0 = inlined_call_operand.vmem [shape: f32[128,48], index: 0, kind: input, shape index: {}]   ;;  %s883_s1 = inlined_call_operand.vmem [shape: bf16[48,32], index: 1, kind: input, shape index: {}]   ;;  %s884_s2 = inlined_call_operand.vmem [shape: f32[1,32], index: 2, kind: input, shape index: {}]   ;;  %s885_s3 = inlined_call_operand.vmem [shape: f32[1,32], index: 3, kind: input, shape index: {}]   ;;  %s886_s4 = inlined_call_operand.vmem [shape: f32[1,32], index: 4, kind: input, shape index: {}]   ;;  %s887_s5 = inlined_call_operand.vmem [shape: bf16[128,32], index: 5, kind: output, shape index: {}]  }
   0x1 LB: > { %s592_s19 = sadd.s32 4294967295, %s667_s18   ;;  %p596_p0 = scmp.ge.s32.totalorder %s667_s18, 1  ;;  %s667_s18 = sphi %s700_s18, %s15_s18  }
   0x2   : > { %p188_p1 = scmp.lt.s32.totalorder %s667_s18, 3 }
   0x4   : > { %p189_p2 = pnand %p596_p0, %p188_p1 }
   0x5   : > { %s597_s22 = sshll.u32 (!%p189_p2), %s592_s19, 3 }
   0x6   : > { %192 = sbr.rel (%p189_p2) target bundleno = 445 (0x1bd), region = 40  ;;  %p217_p3 = scmp.lt.s32.totalorder (!%p189_p2), %s597_s22, 15 }
   0xb   : > { %v621_v0 = vld [vmem:[%s883_s1 + $0x10] sm:$0xff]  ;;  %v620_v1 = vld [vmem:[%s883_s1 + $0x8] sm:$0xff]  ;;  %s889_s22 = smov (!%p217_p3, %s597_s22), 15  ;;  %v619_v2 = vld [vmem:[%s883_s1] sm:$0xff]  ;;  %vm269_vm0 = vcmask 392192   ;;  %vm311_vm1 = vcmask 261120  }
   0xc   : > { %287 = vmatpush.bf16.msra.mxu0 %v621_v0  ;;  %622 = vmatpush.bf16.msra.mxu1 %v621_v0  ;;  %s598_s25 = sshll.u32 %s889_s22, 3  ;;  %v640_v15 = vld [vmem:[%s884_s2] ss:$0 sm:$0xff]  ;;  %v669_v40 = vmov 32.0   ;;  %s600_s12 = sshll.u32 %s889_s22, 2  ;;  %vm527_vm9 = vcmask 257024  }
   0xd   : > { %623 = vmatpush.bf16.msra.mxu2 %v621_v0  ;;  %624 = vmatpush.bf16.msra.mxu3 %v621_v0  ;;  %s220_s30 = scalar_lea.vmem %s882_s0, %s598_s25  ;;  %643 = vrcp.f32 %v669_v40  ;;  %s831_s15 = scalar_lea.vmem %s887_s5, %s600_s12 }
   0xe   : > { %v229_v3 = vld [vmem:[%s220_s30] sm:$0xff]  ;;  %v230_v4 = vld [vmem:[%s220_s30 + $0x8] sm:$0xff]  ;;  %v231_v5 = vld [vmem:[%s220_s30 + $0x10] sm:$0xff] }
   0xf   : > { %v232_v6 = vld [vmem:[%s220_s30 + $0x18] sm:$0xff]  ;;  %v233_v7 = vld [vmem:[%s220_s30 + $0x20] sm:$0xff]  ;;  %v234_v8 = vld [vmem:[%s220_s30 + $0x28] sm:$0xff]  ;;  %v237_v9 = vpack.c.bf16 %v230_v4, %v229_v3 }
  0x10   : > { %288 = vmatpush.bf16.msra.mxu0 %v620_v1  ;;  %625 = vmatpush.bf16.msra.mxu1 %v620_v1  ;;  %v238_v10 = vpack.c.bf16 %v232_v6, %v231_v5  ;;  %v235_v11 = vld [vmem:[%s220_s30 + $0x30] sm:$0xff]  ;;  %v236_v12 = vld [vmem:[%s220_s30 + $0x38] sm:$0xff]  ;;  %v239_v13 = vpack.c.bf16 %v234_v8, %v233_v7 }
  0x11   : > { %626 = vmatpush.bf16.msra.mxu2 %v620_v1  ;;  %627 = vmatpush.bf16.msra.mxu3 %v620_v1  ;;  %v240_v14 = vpack.c.bf16 %v236_v12, %v235_v11 }
  0x13   : > { %v644_v41 = vpop.eup %643 }
  0x14   : > { %289 = vmatpush.bf16.msra.mxu0 %v619_v2  ;;  %628 = vmatpush.bf16.msra.mxu1 %v619_v2  ;;  %v337_v42 = vmul.f32 32.0, %v644_v41  ;;  %vm341_vm2 = vweird.f32 %v644_v41 }
  0x15   : > { %629 = vmatpush.bf16.msra.mxu2 %v619_v2  ;;  %630 = vmatpush.bf16.msra.mxu3 %v619_v2 }
  0x16   : > { %v338_v43 = vsub.f32 1.0, %v337_v42 }
  0x17   : > { %613 = vmatmul.msk.bf16.vlgmr.msra.gmra.mxu0 %vm269_vm0, %v237_v9  ;;  %614 = vmatmul.msk.bf16.vlgmr.msra.gmra.mxu1 %vm269_vm0, %v238_v10 }
  0x18   : > { %615 = vmatmul.msk.bf16.vlgmr.msra.gmra.mxu2 %vm269_vm0, %v239_v13  ;;  %616 = vmatmul.msk.bf16.vlgmr.msra.gmra.mxu3 %vm269_vm0, %v240_v14  ;;  %v339_v44 = vmul.f32 %v644_v41, %v338_v43 }
  0x1a   : > { %v340_v45 = vadd.f32 %v644_v41, %v339_v44 }
  0x1c   : > { %v734_v46 = vsel %vm341_vm2, %v644_v41, %v340_v45 }
  0x94   : > { %v291_v16 = vpop.f32.mrf.mxu0  ;;  %v296_v17 = vpop.f32.mrf.mxu1 }
  0x95   : > { %v292_v18 = vadd.f32 %v640_v15, %v291_v16  ;;  %v297_v19 = vadd.f32 %v640_v15, %v296_v17 }
  0x97   : > { %v318_v20 = vsel %vm311_vm1, %v297_v19, 0.0  ;;  %v312_v21 = vsel %vm311_vm1, %v292_v18, 0.0 }
  0x98   : > { %319 = vadd.xlane.f32.xlu1 %v318_v20  ;;  %313 = vadd.xlane.f32.xlu0 %v312_v21 }
  0x9b   : > { %v301_v22 = vpop.f32.mrf.mxu2  ;;  %v306_v23 = vpop.f32.mrf.mxu3 }
  0x9c   : > { %v302_v24 = vadd.f32 %v640_v15, %v301_v22  ;;  %v293_v25 = vpop.f32.mrf.mxu0  ;;  %v298_v26 = vpop.f32.mrf.mxu1  ;;  %v307_v32 = vadd.f32 %v640_v15, %v306_v23 }
  0x9d   : > { %v294_v27 = vadd.f32 %v640_v15, %v293_v25  ;;  %v299_v28 = vadd.f32 %v640_v15, %v298_v26 }
  0x9e   : > { %v324_v29 = vsel %vm311_vm1, %v302_v24, 0.0  ;;  %v330_v39 = vsel %vm311_vm1, %v307_v32, 0.0 }
  0x9f   : > { %325 = vadd.xlane.f32.xlu2 %v324_v29  ;;  %v321_v30 = vsel %vm311_vm1, %v299_v28, 0.0  ;;  %v315_v31 = vsel %vm311_vm1, %v294_v27, 0.0 }
  0xa0   : > { %322 = vadd.xlane.f32.xlu1 %v321_v30  ;;  %316 = vadd.xlane.f32.xlu0 %v315_v31 }
  0xa3   : > { %v303_v33 = vpop.f32.mrf.mxu2  ;;  %v308_v34 = vpop.f32.mrf.mxu3 }
  0xa4   : > { %v304_v35 = vadd.f32 %v640_v15, %v303_v33  ;;  %v309_v36 = vadd.f32 %v640_v15, %v308_v34 }
  0xa6   : > { %v327_v37 = vsel %vm311_vm1, %v304_v35, 0.0  ;;  %v333_v38 = vsel %vm311_vm1, %v309_v36, 0.0 }
  0xa7   : > { %328 = vadd.xlane.f32.xlu2 %v327_v37 }
  0xa8   : > { %334 = vadd.xlane.f32.xlu1 %v333_v38  ;;  %331 = vadd.xlane.f32.xlu0 %v330_v39 }
 0x10b   : > { %v320_v47 = vpop.xlane.xlu1 %319  ;;  %v314_v48 = vpop.xlane.xlu0 %313 }
 0x10c   : > { %v345_v49 = vmul.f32 %v734_v46, %v320_v47  ;;  %v343_v50 = vmul.f32 %v734_v46, %v314_v48 }
 0x10e   : > { %v738_v51 = vsub.f32 %v297_v19, %v345_v49  ;;  %v740_v52 = vsub.f32 %v292_v18, %v343_v50 }
 0x110   : > { %v361_v53 = vmul.f32 %v738_v51, %v738_v51  ;;  %v359_v54 = vmul.f32 %v740_v52, %v740_v52 }
 0x112   : > { %v326_v55 = vpop.xlane.xlu2 %325  ;;  %v373_v56 = vsel %vm311_vm1, %v361_v53, 0.0  ;;  %v367_v57 = vsel %vm311_vm1, %v359_v54, 0.0 }
 0x113   : > { %v347_v58 = vmul.f32 %v734_v46, %v326_v55  ;;  %374 = vadd.xlane.f32.xlu1 %v373_v56  ;;  %v323_v59 = vpop.xlane.xlu1 %322  ;;  %368 = vadd.xlane.f32.xlu2 %v367_v57  ;;  %v317_v60 = vpop.xlane.xlu0 %316 }
 0x114   : > { %v346_v61 = vmul.f32 %v734_v46, %v323_v59  ;;  %v344_v63 = vmul.f32 %v734_v46, %v317_v60 }
 0x115   : > { %v750_v62 = vsub.f32 %v302_v24, %v347_v58 }
 0x116   : > { %v753_v0 = vsub.f32 %v299_v28, %v346_v61  ;;  %v759_v3 = vsub.f32 %v294_v27, %v344_v63  ;;  %v809_v63 = vld [vmem:[%s885_s3] ss:$0 sm:$0xff] }
 0x117   : > { %v363_v1 = vmul.f32 %v750_v62, %v750_v62 }
 0x118   : > { %v362_v2 = vmul.f32 %v753_v0, %v753_v0  ;;  %v360_v13 = vmul.f32 %v759_v3, %v759_v3 }
 0x119   : > { %v379_v4 = vsel %vm311_vm1, %v363_v1, 0.0 }
 0x11a   : > { %v329_v5 = vpop.xlane.xlu2 %328  ;;  %380 = vadd.xlane.f32.xlu0 %v379_v4  ;;  %v376_v6 = vsel %vm311_vm1, %v362_v2, 0.0  ;;  %v370_v19 = vsel %vm311_vm1, %v360_v13, 0.0 }
 0x11b   : > { %v348_v7 = vmul.f32 %v734_v46, %v329_v5  ;;  %v335_v8 = vpop.xlane.xlu1 %334  ;;  %377 = vadd.xlane.f32.xlu2 %v376_v6  ;;  %v332_v9 = vpop.xlane.xlu0 %331  ;;  %v816_v6 = vld [vmem:[%s886_s4] ss:$0 sm:$0xff] }
 0x11c   : > { %v349_v10 = vmul.f32 %v734_v46, %v332_v9  ;;  %v350_v12 = vmul.f32 %v734_v46, %v335_v8 }
 0x11d   : > { %v765_v11 = vsub.f32 %v304_v35, %v348_v7 }
 0x11e   : > { %v770_v14 = vsub.f32 %v307_v32, %v349_v10  ;;  %v776_v17 = vsub.f32 %v309_v36, %v350_v12 }
 0x11f   : > { %v364_v15 = vmul.f32 %v765_v11, %v765_v11 }
 0x120   : > { %v365_v16 = vmul.f32 %v770_v14, %v770_v14  ;;  %v366_v21 = vmul.f32 %v776_v17, %v776_v17 }
 0x121   : > { %v382_v18 = vsel %vm311_vm1, %v364_v15, 0.0 }
 0x122   : > { %383 = vadd.xlane.f32.xlu1 %v382_v18  ;;  %371 = vadd.xlane.f32.xlu0 %v370_v19  ;;  %v385_v20 = vsel %vm311_vm1, %v365_v16, 0.0  ;;  %v388_v22 = vsel %vm311_vm1, %v366_v21, 0.0 }
 0x123   : > { %386 = vadd.xlane.f32.xlu2 %v385_v20 }
 0x12a   : > { %389 = vadd.xlane.f32.xlu0 %v388_v22 }
 0x186   : > { %v375_v23 = vpop.xlane.xlu1 %374  ;;  %v369_v24 = vpop.xlane.xlu2 %368 }
 0x187   : > { %v393_v25 = vmul.f32 %v375_v23, %v734_v46  ;;  %v391_v26 = vmul.f32 %v369_v24, %v734_v46 }
 0x189   : > { %v401_v27 = vadd.f32 1e-05, %v393_v25  ;;  %v399_v28 = vadd.f32 1e-05, %v391_v26 }
 0x18b   : > { %645 = vrsqrt.f32 %v401_v27  ;;  %vm433_vm5 = vweird.f32 %v401_v27  ;;  %vm413_vm7 = vweird.f32 %v399_v28 }
 0x18c   : > { %647 = vrsqrt.f32 %v399_v28 }
 0x18d   : > { %v381_v29 = vpop.xlane.xlu0 %380 }
 0x18e   : > { %v395_v30 = vmul.f32 %v381_v29, %v734_v46  ;;  %v378_v31 = vpop.xlane.xlu2 %377 }
 0x18f   : > { %v394_v32 = vmul.f32 %v378_v31, %v734_v46 }
 0x190   : > { %v788_v33 = vadd.f32 1e-05, %v395_v30 }
 0x191   : > { %v646_v34 = vpop.eup %645  ;;  %v790_v35 = vadd.f32 1e-05, %v394_v32 }
 0x192   : > { %v648_v36 = vpop.eup %647  ;;  %v428_v37 = vmul.f32 %v646_v34, %v401_v27  ;;  %649 = vrsqrt.f32 %v788_v33  ;;  %vm434_vm3 = vweird.f32 %v646_v34  ;;  %vm453_vm11 = vweird.f32 %v788_v33 }
 0x193   : > { %v408_v38 = vmul.f32 %v648_v36, %v399_v28  ;;  %651 = vrsqrt.f32 %v790_v35  ;;  %vm414_vm4 = vweird.f32 %v648_v36  ;;  %vm435_vm6 = vmor %vm433_vm5, %vm434_vm3  ;;  %vm443_vm13 = vweird.f32 %v790_v35 }
 0x194   : > { %v429_v39 = vmul.f32 %v646_v34, %v428_v37  ;;  %vm415_vm8 = vmor %vm413_vm7, %vm414_vm4 }
 0x195   : > { %v409_v40 = vmul.f32 %v648_v36, %v408_v38  ;;  %v384_v41 = vpop.xlane.xlu1 %383  ;;  %v372_v42 = vpop.xlane.xlu0 %371 }
 0x196   : > { %v430_v43 = vmul.f32 0.5, %v429_v39  ;;  %v396_v44 = vmul.f32 %v384_v41, %v734_v46  ;;  %v392_v45 = vmul.f32 %v372_v42, %v734_v46  ;;  %v387_v47 = vpop.xlane.xlu2 %386 }
 0x197   : > { %v410_v48 = vmul.f32 0.5, %v409_v40  ;;  %v397_v49 = vmul.f32 %v387_v47, %v734_v46 }
 0x198   : > { %v650_v50 = vpop.eup %649  ;;  %v431_v53 = vsub.f32 1.5, %v430_v43  ;;  %v797_v54 = vadd.f32 1e-05, %v396_v44  ;;  %v799_v55 = vadd.f32 1e-05, %v392_v45 }
 0x199   : > { %v652_v56 = vpop.eup %651  ;;  %v411_v57 = vsub.f32 1.5, %v410_v48  ;;  %v448_v58 = vmul.f32 %v650_v50, %v788_v33  ;;  %v802_v59 = vadd.f32 1e-05, %v397_v49  ;;  %vm454_vm10 = vweird.f32 %v650_v50 }
 0x19a   : > { %v432_v60 = vmul.f32 %v646_v34, %v431_v53  ;;  %v438_v61 = vmul.f32 %v652_v56, %v790_v35  ;;  %653 = vrsqrt.f32 %v797_v54  ;;  %vm444_vm12 = vweird.f32 %v652_v56  ;;  %vm455_vm14 = vmor %vm453_vm11, %vm454_vm10 }
 0x19b   : > { %v412_v1 = vmul.f32 %v648_v36, %v411_v57  ;;  %v449_v2 = vmul.f32 %v650_v50, %v448_v58  ;;  %655 = vrsqrt.f32 %v799_v55  ;;  %vm445_vm15 = vmor %vm443_vm13, %vm444_vm12  ;;  %vm463_vm1 = vweird.f32 %v797_v54 }
 0x19c   : > { %v436_v4 = vsel %vm435_vm6, %v646_v34, %v432_v60  ;;  %v439_v5 = vmul.f32 %v652_v56, %v438_v61  ;;  %657 = vrsqrt.f32 %v802_v59  ;;  %vm423_vm5 = vweird.f32 %v799_v55 }
 0x19d   : > { %v489_v7 = vmul.f32 %v436_v4, %v738_v51  ;;  %v416_v8 = vsel %vm415_vm8, %v648_v36, %v412_v1  ;;  %v450_v9 = vmul.f32 0.5, %v449_v2  ;;  %v390_v10 = vpop.xlane.xlu0 %389  ;;  %vm473_vm7 = vweird.f32 %v802_v59 }
 0x19e   : > { %v487_v12 = vmul.f32 %v416_v8, %v740_v52  ;;  %v440_v13 = vmul.f32 0.5, %v439_v5  ;;  %v398_v15 = vmul.f32 %v390_v10, %v734_v46 }
 0x19f   : > { %v501_v16 = vmul.f32 %v809_v63, %v489_v7  ;;  %v451_v18 = vsub.f32 1.5, %v450_v9 }
 0x1a0   : > { %v654_v19 = vpop.eup %653  ;;  %v499_v20 = vmul.f32 %v809_v63, %v487_v12  ;;  %v441_v51 = vsub.f32 1.5, %v440_v13  ;;  %v835_v27 = vadd.f32 1e-05, %v398_v15 }
 0x1a1   : > { %v656_v21 = vpop.eup %655  ;;  %v513_v22 = vadd.f32 %v816_v6, %v501_v16  ;;  %v452_v52 = vmul.f32 %v650_v50, %v451_v18  ;;  %v458_v46 = vmul.f32 %v654_v19, %v797_v54  ;;  %vm464_vm0 = vweird.f32 %v654_v19 }
 0x1a2   : > { %v658_v23 = vpop.eup %657  ;;  %v511_v24 = vadd.f32 %v816_v6, %v499_v20  ;;  %v442_v25 = vmul.f32 %v652_v56, %v441_v51  ;;  %v418_v26 = vmul.f32 %v656_v21, %v799_v55  ;;  %659 = vrsqrt.f32 %v835_v27  ;;  %vm465_vm4 = vmor %vm463_vm1, %vm464_vm0 }
 0x1a3   : > { %v521_v28 = vpack.c.bf16 %v513_v22, %v513_v22  ;;  %v456_v29 = vsel %vm455_vm14, %v650_v50, %v452_v52  ;;  %v459_v30 = vmul.f32 %v654_v19, %v458_v46  ;;  %v468_v31 = vmul.f32 %v658_v23, %v802_v59 }
 0x1a4   : > { %v519_v32 = vpack.c.bf16 %v511_v24, %v511_v24  ;;  %v491_v33 = vmul.f32 %v456_v29, %v750_v62  ;;  %v446_v34 = vsel %vm445_vm15, %v652_v56, %v442_v25  ;;  %v419_v35 = vmul.f32 %v656_v21, %v418_v26 }
 0x1a5   : > { %530 = vst.msk [vmem:[%s831_s15 + $0x8] sm:$0xf] %vm527_vm9, %v521_v28  ;;  %v490_v36 = vmul.f32 %v446_v34, %v753_v0  ;;  %v460_v37 = vmul.f32 0.5, %v459_v30  ;;  %v469_v38 = vmul.f32 %v658_v23, %v468_v31  ;;  %vm424_vm2 = vweird.f32 %v656_v21 }
 0x1a6   : > { %528 = vst.msk [vmem:[%s831_s15] sm:$0xf] %vm527_vm9, %v519_v32  ;;  %v503_v39 = vmul.f32 %v809_v63, %v491_v33  ;;  %v420_v40 = vmul.f32 0.5, %v419_v35  ;;  %vm474_vm3 = vweird.f32 %v658_v23  ;;  %vm425_vm6 = vmor %vm423_vm5, %vm424_vm2  ;;  %vm483_vm11 = vweird.f32 %v835_v27 }
 0x1a7   : > { %v502_v41 = vmul.f32 %v809_v63, %v490_v36  ;;  %v461_v42 = vsub.f32 1.5, %v460_v37  ;;  %v470_v62 = vmul.f32 0.5, %v469_v38  ;;  %vm475_vm8 = vmor %vm473_vm7, %vm474_vm3 }
 0x1a8   : > { %v515_v43 = vadd.f32 %v816_v6, %v503_v39  ;;  %v421_v44 = vsub.f32 1.5, %v420_v40  ;;  %v660_v54 = vpop.eup %659 }
 0x1a9   : > { %v514_v0 = vadd.f32 %v816_v6, %v502_v41  ;;  %v462_v45 = vmul.f32 %v654_v19, %v461_v42  ;;  %v471_v47 = vsub.f32 1.5, %v470_v62  ;;  %v478_v55 = vmul.f32 %v660_v54, %v835_v27 }
 0x1aa   : > { %v523_v48 = vpack.c.bf16 %v515_v43, %v515_v43  ;;  %v422_v49 = vmul.f32 %v656_v21, %v421_v44  ;;  %vm484_vm10 = vweird.f32 %v660_v54 }
 0x1ab   : > { %v522_v50 = vpack.c.bf16 %v514_v0, %v514_v0  ;;  %v466_v53 = vsel %vm465_vm4, %v654_v19, %v462_v45  ;;  %v472_v56 = vmul.f32 %v658_v23, %v471_v47  ;;  %v479_v4 = vmul.f32 %v660_v54, %v478_v55  ;;  %vm485_vm12 = vmor %vm483_vm11, %vm484_vm10 }
 0x1ac   : > { %532 = vst.msk [vmem:[%s831_s15 + $0x10] sm:$0xf] %vm527_vm9, %v523_v48  ;;  %v492_v57 = vmul.f32 %v466_v53, %v765_v11  ;;  %v426_v58 = vsel %vm425_vm6, %v656_v21, %v422_v49 }
 0x1ad   : > { %531 = vst.msk [vmem:[%s831_s15 + $0xc] sm:$0xf] %vm527_vm9, %v522_v50  ;;  %v488_v60 = vmul.f32 %v426_v58, %v759_v3  ;;  %v476_v61 = vsel %vm475_vm8, %v658_v23, %v472_v56  ;;  %v480_v3 = vmul.f32 0.5, %v479_v4 }
 0x1ae   : > { %v504_v1 = vmul.f32 %v809_v63, %v492_v57  ;;  %v493_v59 = vmul.f32 %v476_v61, %v770_v14 }
 0x1af   : > { %v500_v2 = vmul.f32 %v809_v63, %v488_v60  ;;  %v481_v12 = vsub.f32 1.5, %v480_v3 }
 0x1b0   : > { %v516_v11 = vadd.f32 %v816_v6, %v504_v1  ;;  %v505_v5 = vmul.f32 %v809_v63, %v493_v59 }
 0x1b1   : > { %v512_v7 = vadd.f32 %v816_v6, %v500_v2  ;;  %v482_v13 = vmul.f32 %v660_v54, %v481_v12 }
 0x1b2   : > { %v524_v8 = vpack.c.bf16 %v516_v11, %v516_v11  ;;  %v517_v9 = vadd.f32 %v816_v6, %v505_v5 }
 0x1b3   : > { %v520_v10 = vpack.c.bf16 %v512_v7, %v512_v7  ;;  %v486_v15 = vsel %vm485_vm12, %v660_v54, %v482_v13 }
 0x1b4   : > { %533 = vst.msk [vmem:[%s831_s15 + $0x14] sm:$0xf] %vm527_vm9, %v524_v8  ;;  %v525_v14 = vpack.c.bf16 %v517_v9, %v517_v9  ;;  %v494_v16 = vmul.f32 %v486_v15, %v776_v17 }
 0x1b5   : > { %529 = vst.msk [vmem:[%s831_s15 + $0x4] sm:$0xf] %vm527_vm9, %v520_v10 }
 0x1b6   : > { %534 = vst.msk [vmem:[%s831_s15 + $0x18] sm:$0xf] %vm527_vm9, %v525_v14  ;;  %v506_v18 = vmul.f32 %v809_v63, %v494_v16 }
 0x1b8   : > { %v518_v19 = vadd.f32 %v816_v6, %v506_v18 }
 0x1ba   : > { %v526_v20 = vpack.c.bf16 %v518_v19, %v518_v19 }
 0x1bc   : > { %535 = vst.msk [vmem:[%s831_s15 + $0x1c] sm:$0xf] %vm527_vm9, %v526_v20 }
 0x1bd PF: > { %s15_s18 = sadd.s32 1, %s667_s18  }
 0x1be   : > { %p12_p4 = scmp.ge.s32.totalorder %s15_s18, 4  }
 0x1c0   :  { %14 = sbr.rel (!%p12_p4) target bundleno = 1 (0x1), region = 70 }

</bundles_post_ra>
